<compile_context>
chip_gen: v7x
topology: tpu7x:2x2x1
jax: 0.10.0
libtpu: 0.0.40
codegen_flags: <defaults>
</compile_context>

<pallas_src>
import jax
import jax.numpy as jnp
from jax.experimental import pallas as pl
from jax.experimental.pallas import tpu as pltpu

_LANES = 128
_SUBLANES = 8


def _binary_classifier_kernel(w_ref, b_ref, x_ref, o_ref):
    # w_ref, b_ref: (1,) f32 in SMEM (one-time scalar loads).
    # x_ref, o_ref: (TM, 128) f32 tiles in VMEM.
    w = w_ref[0]
    b = b_ref[0]
    z = x_ref[...] * w + b                    # Linear(1, 1): elementwise x*w + b
    # sigmoid(z) == 0.5 * (tanh(0.5 * z) + 1): one EUP op instead of exp+recip.
    o_ref[...] = 0.5 * (jnp.tanh(0.5 * z) + 1.0)


def _round_up(v, m):
    return ((v + m - 1) // m) * m


def _default_tile_rows():
    """Generation-aware row-tile: 1 MiB blocks (v5e/v6e), 2 MiB on v7x."""
    try:
        kind = jax.devices()[0].device_kind.lower()
    except Exception:
        kind = ""
    if "v7" in kind:
        return 4096   # 2 MiB/block; 8 MiB double-buffered in+out, << 32 MiB scoped
    return 2048       # 1 MiB/block; near HBM roofline on v5e/v6e


def binary_classifier_forward(x, weight, bias, *, tile_rows=None):
    """x: (N, 1) f32, weight: (1, 1) f32, bias: (1,) f32 -> (N, 1) f32."""
    n = x.shape[0]
    if tile_rows is None:
        tile_rows = _default_tile_rows()
    tile_rows = max(_SUBLANES, _round_up(tile_rows, _SUBLANES))

    if n % _LANES == 0:
        # Fast path: (N,1) -> (rows,128) is a free relayout, no pad / no trim.
        rows = n // _LANES
        x2d = x.reshape(rows, _LANES)
        pad = 0
    else:
        # Ragged N: pad only up to the next (8*128)-element boundary.
        padded_n = _round_up(n, _SUBLANES * _LANES)
        pad = padded_n - n
        rows = padded_n // _LANES
        x2d = jnp.pad(x.reshape(-1), (0, pad)).reshape(rows, _LANES)

    # Row-tile: at least 2 blocks when possible (v7x TC sharding + DMA/compute
    # overlap); partial last block is masked by Pallas.
    if rows >= 2 * _SUBLANES:
        tm = min(tile_rows, _round_up(pl.cdiv(rows, 2), _SUBLANES))
    else:
        tm = _round_up(rows, _SUBLANES)
    grid = (pl.cdiv(rows, tm),)

    out2d = pl.pallas_call(
        _binary_classifier_kernel,
        out_shape=jax.ShapeDtypeStruct((rows, _LANES), jnp.float32),
        grid_spec=pltpu.PrefetchScalarGridSpec(
            num_scalar_prefetch=0,
            grid=grid,
            in_specs=[
                pl.BlockSpec(memory_space=pltpu.MemorySpace.SMEM),   # weight (1,)
                pl.BlockSpec(memory_space=pltpu.MemorySpace.SMEM),   # bias   (1,)
                pl.BlockSpec((tm, _LANES), lambda i: (i, 0)),        # x tile
            ],
            out_specs=pl.BlockSpec((tm, _LANES), lambda i: (i, 0)),
        ),
        compiler_params=pltpu.CompilerParams(
            dimension_semantics=("parallel",)),
    )(weight.reshape(1).astype(jnp.float32),
      bias.reshape(1).astype(jnp.float32),
      x2d)

    if pad:
        return out2d.reshape(-1)[:n].reshape(n, 1)
    return out2d.reshape(n, 1)


def reference_forward(x, weight, bias):
    return jax.nn.sigmoid(x @ weight.T + bias)


if __name__ == "__main__":
    key = jax.random.PRNGKey(0)
    kw, kb, kx = jax.random.split(key, 3)

    # nn.Linear(1,1) init: U(-1, 1) since fan_in = 1.
    weight = jax.random.uniform(kw, (1, 1), jnp.float32, minval=-1.0, maxval=1.0)
    bias = jax.random.uniform(kb, (1,), jnp.float32, minval=-1.0, maxval=1.0)

    # Input consistent with the script's data: x = [2,4,6,8,10,12,14] -> (7, 1)
    x = jnp.array([2., 4., 6., 8., 10., 12., 14.], dtype=jnp.float32).reshape(-1, 1)
    out = jax.block_until_ready(binary_classifier_forward(x, weight, bias))
    ref = reference_forward(x, weight, bias)
    assert out.shape == (7, 1)
    assert jnp.allclose(out, ref, atol=1e-5, rtol=1e-5), (out, ref)

    # Ragged N: default tiles -> rows=24, tm=16, grid=(2,), partial last block.
    x_big = jax.random.normal(kx, (3000, 1), jnp.float32) * 5.0
    out_big = jax.block_until_ready(binary_classifier_forward(x_big, weight, bias))
    ref_big = reference_forward(x_big, weight, bias)
    assert out_big.shape == (3000, 1)
    assert jnp.allclose(out_big, ref_big, atol=1e-5, rtol=1e-5)

    # Same data with a tiny tile to exercise a longer grid (tm=8 -> grid=(3,)).
    out_small_tile = jax.block_until_ready(
        binary_classifier_forward(x_big, weight, bias, tile_rows=8))
    assert jnp.allclose(out_small_tile, ref_big, atol=1e-5, rtol=1e-5)

    # Fast path: N % 128 == 0 -> no pad, no trim; rows=16 -> tm=8, grid=(2,).
    x_aligned = jax.random.normal(jax.random.PRNGKey(1), (2048, 1), jnp.float32) * 3.0
    out_al = jax.block_until_ready(binary_classifier_forward(x_aligned, weight, bias))
    ref_al = reference_forward(x_aligned, weight, bias)
    assert out_al.shape == (2048, 1)
    assert jnp.allclose(out_al, ref_al, atol=1e-5, rtol=1e-5)

    print("KERNEL_OK")
</pallas_src>

<mosaic_0001>
module attributes {stable_mosaic.version = 11 : i64} {
  func.func @_binary_classifier_kernel(%arg0: i32, %arg1: memref<1xf32, #tpu.memory_space<smem>>, %arg2: memref<1xf32, #tpu.memory_space<smem>>, %arg3: memref<8x128xf32, #tpu.memory_space<vmem>>, %arg4: memref<8x128xf32, #tpu.memory_space<vmem>>) attributes {dimension_semantics = [#tpu.dimension_semantics<parallel>], iteration_bounds = array<i64: 1>, scalar_prefetch = 0 : i64, scratch_operands = 0 : i64, tpu.core_type = #tpu.core_type<tc>, window_params = [{transform_indices = @transform_0, window_bounds = array<i64: 1>}, {transform_indices = @transform_1, window_bounds = array<i64: 1>}, {transform_indices = @transform_2, window_bounds = array<i64: 8, 128>}, {transform_indices = @transform_3, window_bounds = array<i64: 8, 128>}]} {
    %c0 = arith.constant 0 : index
    %0 = memref.load %arg1[%c0] : memref<1xf32, #tpu.memory_space<smem>>
    %c0_0 = arith.constant 0 : index
    %1 = memref.load %arg2[%c0_0] : memref<1xf32, #tpu.memory_space<smem>>
    %c0_1 = arith.constant 0 : index
    %c0_2 = arith.constant 0 : index
    %2 = vector.load %arg3[%c0_1, %c0_2] : memref<8x128xf32, #tpu.memory_space<vmem>>, vector<8x128xf32>
    %3 = vector.broadcast %0 : f32 to vector<8x128xf32>
    %4 = arith.mulf %2, %3 : vector<8x128xf32>
    %5 = vector.broadcast %1 : f32 to vector<8x128xf32>
    %6 = arith.addf %4, %5 : vector<8x128xf32>
    %cst = arith.constant 5.000000e-01 : f32
    %7 = vector.broadcast %cst : f32 to vector<8x128xf32>
    %8 = arith.mulf %7, %6 : vector<8x128xf32>
    %9 = math.tanh %8 : vector<8x128xf32>
    %cst_3 = arith.constant 1.000000e+00 : f32
    %10 = vector.broadcast %cst_3 : f32 to vector<8x128xf32>
    %11 = arith.addf %9, %10 : vector<8x128xf32>
    %cst_4 = arith.constant 5.000000e-01 : f32
    %12 = vector.broadcast %cst_4 : f32 to vector<8x128xf32>
    %13 = arith.mulf %12, %11 : vector<8x128xf32>
    %c0_5 = arith.constant 0 : index
    %c0_6 = arith.constant 0 : index
    %14 = vector.load %arg4[%c0_5, %c0_6] : memref<8x128xf32, #tpu.memory_space<vmem>>, vector<8x128xf32>
    tpu.vector_store %arg4[%c0_5, %c0_6], %13 {strides = array<i32>} : memref<8x128xf32, #tpu.memory_space<vmem>>, vector<8x128xf32>,
    return
  }
  func.func @transform_0(%arg0: i32) -> i32 {
    %c0_i32 = arith.constant 0 : i32
    %c0_i32_0 = arith.constant 0 : i32
    return %c0_i32 : i32
  }
  func.func @transform_1(%arg0: i32) -> i32 {
    %c0_i32 = arith.constant 0 : i32
    %c0_i32_0 = arith.constant 0 : i32
    return %c0_i32 : i32
  }
  func.func @transform_2(%arg0: i32) -> (i32, i32) {
    %c0_i32 = arith.constant 0 : i32
    %c0_i32_0 = arith.constant 0 : i32
    return %arg0, %c0_i32 : i32, i32
  }
  func.func @transform_3(%arg0: i32) -> (i32, i32) {
    %c0_i32 = arith.constant 0 : i32
    %c0_i32_0 = arith.constant 0 : i32
    return %arg0, %c0_i32 : i32, i32
  }
}

</mosaic_0001>

<bundles_post_ra>
// kernel: tpu_custom_call.1
= control target key start
LH: loop header
LB: loop body
LE: loop exit
PB: predicated region body
PF: predicated region fallthrough
CT: control target
= control target key end

     0   :  { %10 = vsyncpa [#allocation5], 0  ;;  %s160_s0 = inlined_call_operand.<no memory space> [shape: f32[1], index: 0, kind: input, shape index: {}]   ;;  %s161_s1 = inlined_call_operand.<no memory space> [shape: f32[1], index: 1, kind: input, shape index: {}]   ;;  %s162_s2 = inlined_call_operand.hbm [shape: f32[8,128], index: 2, kind: input, shape index: {}]   ;;  %s163_s3 = inlined_call_operand.hbm [shape: f32[8,128], index: 3, kind: output, shape index: {}]  }
   0x1   :  { %11 = vsyncpa [#allocation6], 0  ;;  %s108_s12 = smov [#allocation4]   ;;  %s60_s16 = scalar_lea.hbm %s162_s2, 128 }
   0x2   :  { %s22_s13 = sshll.u32 %s108_s12, 4  ;;  %p61_p0 = scmp.ne.s32.totalorder %s162_s2, %s60_s16  ;;  %s23_s13 = int_to_ptr.vmem [resolvable:$true] %s22_s13 }
   0x3   :  { %p64_p1 = scmp.lt.u32.totalorder %s60_s16, %s162_s2 }
   0x5   :  { %p66_p2 = pnand %p64_p1, %p61_p0 }
   0x7   :  { %69 = shalt.err (!%p66_p2)
}
   0x8   :  { %s70_s21 = scalar_lea.vmem %s23_s13, 128  ;;  %p75_p4 = scmp.lt.s32.totalorder %s23_s13, %s23_s13 }
   0x9   :  { %p71_p3 = scmp.ne.s32.totalorder %s23_s13, %s70_s21  ;;  %p76_p5 = scmp.lt.s32.totalorder %s70_s21, %s70_s21 }
   0xb   :  { %p77_p6 = por %p76_p5, %p75_p4 }
   0xd   :  { %p78_p7 = pnand %p77_p6, %p71_p3 }
   0xf   :  { %81 = shalt.err (!%p78_p7)
}
  0x10   :  { %25 = dma.hbm_to_vmem [thread:$0]  %s162_s2, 128, %s23_s13, [#allocation5]  }
  0x11   :  { %104 = dma.done.wait [#allocation5], 128  }
  0x12   :  { %105 = vsyncadd [#allocation5], 4294967168  ;;  %v32_v0 = vstv %s160_s0  ;;  %v31_v1 = vld [vmem:[#allocation4] sm:$0xff]  ;;  %v34_v2 = vstv %s161_s1  ;;  %s109_s28 = smov [#allocation7]  }
  0x13   :  { %v33_v3 = vmul.f32 %v32_v0, %v31_v1  ;;  %s47_s29 = sshll.u32 %s109_s28, 4  ;;  %s48_s29 = int_to_ptr.vmem [resolvable:$true] %s47_s29 }
  0x14   :  { %s82_s2 = scalar_lea.vmem %s48_s29, 128  ;;  %p87_p9 = scmp.lt.s32.totalorder %s48_s29, %s48_s29 }
  0x15   :  { %v35_v4 = vadd.f32 %v34_v2, %v33_v3  ;;  %p83_p8 = scmp.ne.s32.totalorder %s48_s29, %s82_s2  ;;  %p88_p10 = scmp.lt.s32.totalorder %s82_s2, %s82_s2 }
  0x17   :  { %v36_v5 = vmul.f32 0.5, %v35_v4  ;;  %p89_p11 = por %p88_p10, %p87_p9 }
  0x19   :  { %58 = vtanh.f32 %v36_v5  ;;  %p90_p12 = pnand %p89_p11, %p83_p8 }
  0x23   :  { %v59_v6 = vpop.eup %58 }
  0x24   :  { %v38_v7 = vadd.f32 1.0, %v59_v6 }
  0x26   :  { %v39_v8 = vmul.f32 0.5, %v38_v7 }
  0x28   :  { %40 = vst [vmem:[#allocation7] sm:$0xff] %v39_v8 }
  0x29   :  { %93 = shalt.err (!%p90_p12)
}
  0x2a   :  { %s94_s30 = scalar_lea.hbm %s163_s3, 128 }
  0x2b   :  { %p95_p13 = scmp.ne.s32.totalorder %s163_s3, %s94_s30  ;;  %p98_p0 = scmp.lt.u32.totalorder %s94_s30, %s163_s3 }
  0x2d   :  { %p100_p1 = pnand %p98_p0, %p95_p13 }
  0x2f   :  { %103 = shalt.err (!%p100_p1)
}
  0x30   :  { %50 = dma.vmem_to_hbm [thread:$0]  %s48_s29, 128, %s163_s3, [#allocation6]  }
  0x31   :  { %106 = dma.done.wait [#allocation6], 128  }
  0x32   :  { %107 = vsyncadd [#allocation6], 4294967168 }
  0x33   :  { %54 = vsyncpa [#allocation5], 1 }
  0x34   :  { %55 = vsyncpa [#allocation6], 1 }

</bundles_post_ra>
